<compile_context>
chip_gen: v7x
topology: tpu7x:2x2x1
jax: 0.10.0
libtpu: 0.0.40
codegen_flags: <defaults>
</compile_context>

<pallas_src>
import functools

import jax
import jax.numpy as jnp
from jax import lax
from jax.experimental import pallas as pl
from jax.experimental.pallas import tpu as pltpu

_LANE = 128


def _layernorm_kernel(x_ref, a_ref, b_ref, o_ref, *, eps, features, padded_features):
    # x_ref: (tile_rows, padded_features); a_ref/b_ref: (1, padded_features)
    x = x_ref[...].astype(jnp.float32)

    inv_n = jnp.float32(1.0 / features)
    inv_nm1 = (
        jnp.float32(1.0 / (features - 1)) if features > 1 else jnp.float32(jnp.inf)
    )

    if padded_features != features:
        # Padded lanes hold zeros, so the plain sum already equals the true
        # sum; only the squared-diff reduction needs an explicit lane mask.
        mean = jnp.sum(x, axis=-1, keepdims=True) * inv_n
        lane = lax.broadcasted_iota(jnp.int32, x.shape, 1)
        d = x - mean
        var = (
            jnp.sum(jnp.where(lane < features, d * d, 0.0), axis=-1, keepdims=True)
            * inv_nm1
        )
    else:
        mean = jnp.sum(x, axis=-1, keepdims=True) * inv_n
        d = x - mean
        var = jnp.sum(d * d, axis=-1, keepdims=True) * inv_nm1

    std = jnp.sqrt(var)
    # EUP reciprocal (exact) + VPU multiply instead of a per-element divide.
    inv = pl.reciprocal(std + jnp.float32(eps), approx=False)

    a = a_ref[...].astype(jnp.float32)
    b = b_ref[...].astype(jnp.float32)
    # Recompute (x - mean) inline so no full-tile temporary stays live across
    # the reduction (saves one vst/vld round trip per element).
    o_ref[...] = (a * ((x - mean) * inv) + b).astype(o_ref.dtype)


def _vmem_capacity_bytes():
    """Physical VMEM of the current TPU generation (v7x-safe fallback)."""
    default = 64 * 1024 * 1024
    try:
        info = pltpu.get_tpu_info()
        cap = int(getattr(info, "vmem_capacity_bytes", default))
        return cap if cap > 0 else default
    except Exception:
        return default


def _pick_tile_rows(rows, padded_features, itemsize, vmem_capacity):
    """Largest sublane-aligned row tile fitting the generation-aware budget."""
    # Sublane multiple for the I/O dtype (f32: 8, bf16: 16, int8/fp8: 32).
    sublane = 8 if itemsize >= 4 else (16 if itemsize == 2 else 32)
    # Per-row VMEM bytes: double-buffered in + out tiles (4 * itemsize) plus
    # ~1 live f32 working tile inside the kernel (4 bytes/elem).
    bytes_per_row = padded_features * (4 * itemsize + 4)
    budget = max(int(0.40 * vmem_capacity), 8 << 20)
    max_rows = max(budget // max(bytes_per_row, 1), sublane)
    # Keep >= ~4 grid steps when rows allow, so the "parallel" row axis can be
    # sharded across v7x's two TensorCores and the DMA pipeline stays full.
    target_steps = 4
    per_step = -(-rows // target_steps)            # cdiv(rows, target_steps)
    per_step = -(-per_step // sublane) * sublane   # round up to sublane mult
    tile = min(max_rows, max(per_step, sublane))
    tile = max((tile // sublane) * sublane, sublane)
    return int(tile)


def layer_norm(x, a_2, b_2, *, eps=1e-6, tile_rows=None):
    """LayerNorm over the last axis of x, matching the PyTorch reference."""
    features = x.shape[-1]
    orig_shape = x.shape
    x2d = x.reshape(-1, features)  # leading-dim collapse: no HBM copy
    rows = x2d.shape[0]
    itemsize = jnp.dtype(x.dtype).itemsize

    # Lane-dense padding of the feature axis to a multiple of 128 so in-kernel
    # stores use unmasked vst (biggest single lever for small/ragged hiddens).
    padded_features = ((features + _LANE - 1) // _LANE) * _LANE
    if padded_features != features:
        pad = padded_features - features
        x2d = jnp.pad(x2d, ((0, 0), (0, pad)))
        a2d = jnp.pad(a_2.reshape(1, features), ((0, 0), (0, pad)))
        b2d = jnp.pad(b_2.reshape(1, features), ((0, 0), (0, pad)))
    else:
        a2d = a_2.reshape(1, features)
        b2d = b_2.reshape(1, features)

    vmem_cap = _vmem_capacity_bytes()
    if tile_rows is None:
        tile_rows = _pick_tile_rows(rows, padded_features, itemsize, vmem_cap)

    # No host-side row padding: the ragged last block (if any) is masked by
    # Pallas; out-of-range rows compute garbage that is never written back.
    grid = (pl.cdiv(rows, tile_rows),)

    kernel = functools.partial(
        _layernorm_kernel,
        eps=eps,
        features=features,
        padded_features=padded_features,
    )

    # Scoped-VMEM limit: enough for the chosen tile with headroom, capped at
    # 70% of physical VMEM (~45 MiB on v7x's 64 MiB, ~90 MiB on 128 MiB parts).
    needed = tile_rows * padded_features * (4 * itemsize + 4)
    cap = max(int(0.70 * vmem_cap), 16 << 20)
    vmem_limit = min(max(int(1.3 * needed) + (2 << 20), 16 << 20), cap)

    # Note: if profiling on v7x shows exposed DMA, sweep
    # pipeline_mode=pl.Buffered(3) on the x input spec (shrinking tile_rows
    # ~30% to pay for the third buffer).
    out = pl.pallas_call(
        kernel,
        out_shape=jax.ShapeDtypeStruct((rows, padded_features), x.dtype),
        grid_spec=pltpu.PrefetchScalarGridSpec(
            num_scalar_prefetch=0,
            grid=grid,
            in_specs=[
                pl.BlockSpec((tile_rows, padded_features), lambda i: (i, 0)),
                pl.BlockSpec((1, padded_features), lambda i: (0, 0)),
                pl.BlockSpec((1, padded_features), lambda i: (0, 0)),
            ],
            out_specs=pl.BlockSpec((tile_rows, padded_features), lambda i: (i, 0)),
        ),
        compiler_params=pltpu.CompilerParams(
            dimension_semantics=("parallel",),
            vmem_limit_bytes=vmem_limit,
        ),
    )(x2d, a2d, b2d)

    if padded_features != features:
        out = out[:, :features]
    return out.reshape(orig_shape)


def layer_norm_ref(x, a_2, b_2, eps=1e-6):
    """Pure-JAX reference mirroring the PyTorch forward exactly."""
    x = x.astype(jnp.float32)
    mean = jnp.mean(x, axis=-1, keepdims=True)
    std = jnp.sqrt(
        jnp.sum((x - mean) ** 2, axis=-1, keepdims=True) / (x.shape[-1] - 1)
    )
    return a_2 * (x - mean) / (std + eps) + b_2


if __name__ == "__main__":
    key = jax.random.PRNGKey(0)

    batch, seq, hidden = 2, 8, 32  # features = hidden
    x = jax.random.normal(key, (batch, seq, hidden), dtype=jnp.float32)

    # Deterministic parameter init per module __init__: a_2 = ones, b_2 = zeros
    a_2 = jnp.ones((hidden,), dtype=jnp.float32)
    b_2 = jnp.zeros((hidden,), dtype=jnp.float32)

    out = layer_norm(x, a_2, b_2, eps=1e-6)
    out = jax.block_until_ready(out)

    ref = layer_norm_ref(x, a_2, b_2, eps=1e-6)
    assert out.shape == x.shape and out.dtype == x.dtype
    assert jnp.allclose(out, ref, atol=1e-5, rtol=1e-5), "mismatch vs reference"

    print("KERNEL_OK")
</pallas_src>

<mosaic_0001>
module attributes {stable_mosaic.version = 11 : i64} {
  func.func @_layernorm_kernel(%arg0: i32, %arg1: memref<8x128xf32, #tpu.memory_space<vmem>>, %arg2: memref<1x128xf32, #tpu.memory_space<vmem>>, %arg3: memref<1x128xf32, #tpu.memory_space<vmem>>, %arg4: memref<8x128xf32, #tpu.memory_space<vmem>>) attributes {dimension_semantics = [#tpu.dimension_semantics<parallel>], iteration_bounds = array<i64: 2>, scalar_prefetch = 0 : i64, scratch_operands = 0 : i64, tpu.core_type = #tpu.core_type<tc>, window_params = [{transform_indices = @transform_0, window_bounds = array<i64: 8, 128>}, {pipeline_mode = #tpu.pipeline_mode<synchronous>, transform_indices = @transform_1, window_bounds = array<i64: 1, 128>}, {pipeline_mode = #tpu.pipeline_mode<synchronous>, transform_indices = @transform_2, window_bounds = array<i64: 1, 128>}, {transform_indices = @transform_3, window_bounds = array<i64: 8, 128>}]} {
    %c0 = arith.constant 0 : index
    %c0_0 = arith.constant 0 : index
    %0 = vector.load %arg1[%c0, %c0_0] : memref<8x128xf32, #tpu.memory_space<vmem>>, vector<8x128xf32>
    %cst = arith.constant dense<0.000000e+00> : vector<8xf32>
    %1 = vector.multi_reduction <add>, %0, %cst [1] : vector<8x128xf32> to vector<8xf32>
    %2 = vector.shape_cast %1 : vector<8xf32> to vector<8x1xf32>
    %cst_1 = arith.constant 3.125000e-02 : f32
    %3 = vector.broadcast %cst_1 : f32 to vector<8x1xf32>
    %4 = arith.mulf %2, %3 : vector<8x1xf32>
    %5 = tpu.iota {dimensions = array<i32: 1>} : vector<8x128xi32>
    %6 = vector.broadcast %4 : vector<8x1xf32> to vector<8x128xf32>
    %7 = arith.subf %0, %6 : vector<8x128xf32>
    %c32_i32 = arith.constant 32 : i32
    %8 = vector.broadcast %c32_i32 : i32 to vector<8x128xi32>
    %9 = arith.cmpi slt, %5, %8 : vector<8x128xi32>
    %10 = arith.mulf %7, %7 : vector<8x128xf32>
    %cst_2 = arith.constant 0.000000e+00 : f32
    %11 = vector.broadcast %cst_2 : f32 to vector<8x128xf32>
    %12 = arith.select %9, %10, %11 : vector<8x128xi1>, vector<8x128xf32>
    %cst_3 = arith.constant dense<0.000000e+00> : vector<8xf32>
    %13 = vector.multi_reduction <add>, %12, %cst_3 [1] : vector<8x128xf32> to vector<8xf32>
    %14 = vector.shape_cast %13 : vector<8xf32> to vector<8x1xf32>
    %cst_4 = arith.constant 0.0322580636 : f32
    %15 = vector.broadcast %cst_4 : f32 to vector<8x1xf32>
    %16 = arith.mulf %14, %15 : vector<8x1xf32>
    %17 = math.sqrt %16 : vector<8x1xf32>
    %cst_5 = arith.constant 9.99999997E-7 : f32
    %18 = vector.broadcast %cst_5 : f32 to vector<8x1xf32>
    %19 = arith.addf %17, %18 : vector<8x1xf32>
    %20 = tpu.reciprocal %19 : vector<8x1xf32> -> vector<8x1xf32>
    %c0_6 = arith.constant 0 : index
    %c0_7 = arith.constant 0 : index
    %21 = vector.load %arg2[%c0_6, %c0_7] : memref<1x128xf32, #tpu.memory_space<vmem>>, vector<1x128xf32>
    %c0_8 = arith.constant 0 : index
    %c0_9 = arith.constant 0 : index
    %22 = vector.load %arg3[%c0_8, %c0_9] : memref<1x128xf32, #tpu.memory_space<vmem>>, vector<1x128xf32>
    %23 = vector.broadcast %4 : vector<8x1xf32> to vector<8x128xf32>
    %24 = arith.subf %0, %23 : vector<8x128xf32>
    %25 = vector.broadcast %20 : vector<8x1xf32> to vector<8x128xf32>
    %26 = arith.mulf %24, %25 : vector<8x128xf32>
    %27 = vector.broadcast %21 : vector<1x128xf32> to vector<8x128xf32>
    %28 = arith.mulf %27, %26 : vector<8x128xf32>
    %29 = vector.broadcast %22 : vector<1x128xf32> to vector<8x128xf32>
    %30 = arith.addf %28, %29 : vector<8x128xf32>
    %c0_10 = arith.constant 0 : index
    %c0_11 = arith.constant 0 : index
    %31 = vector.load %arg4[%c0_10, %c0_11] : memref<8x128xf32, #tpu.memory_space<vmem>>, vector<8x128xf32>
    tpu.vector_store %arg4[%c0_10, %c0_11], %30 {strides = array<i32>} : memref<8x128xf32, #tpu.memory_space<vmem>>, vector<8x128xf32>,
    return
  }
  func.func @transform_0(%arg0: i32) -> (i32, i32) {
    %c0_i32 = arith.constant 0 : i32
    %c0_i32_0 = arith.constant 0 : i32
    return %arg0, %c0_i32 : i32, i32
  }
  func.func @transform_1(%arg0: i32) -> (i32, i32) {
    %c0_i32 = arith.constant 0 : i32
    %c0_i32_0 = arith.constant 0 : i32
    %c0_i32_1 = arith.constant 0 : i32
    return %c0_i32, %c0_i32_0 : i32, i32
  }
  func.func @transform_2(%arg0: i32) -> (i32, i32) {
    %c0_i32 = arith.constant 0 : i32
    %c0_i32_0 = arith.constant 0 : i32
    %c0_i32_1 = arith.constant 0 : i32
    return %c0_i32, %c0_i32_0 : i32, i32
  }
  func.func @transform_3(%arg0: i32) -> (i32, i32) {
    %c0_i32 = arith.constant 0 : i32
    %c0_i32_0 = arith.constant 0 : i32
    return %arg0, %c0_i32 : i32, i32
  }
}

</mosaic_0001>

<bundles_post_ra>
// kernel: tpu_custom_call.1
= control target key start
LH: loop header
LB: loop body
LE: loop exit
PB: predicated region body
PF: predicated region fallthrough
CT: control target
= control target key end

     0   :  { %8 = vsyncpa [#allocation3], 0  ;;  %s665_s0 = inlined_call_operand.hbm [shape: f32[16,128], index: 0, kind: input, shape index: {}]   ;;  %s666_s1 = inlined_call_operand.vmem [shape: f32[1,128], index: 1, kind: input, shape index: {}]   ;;  %s667_s2 = inlined_call_operand.vmem [shape: f32[1,128], index: 2, kind: input, shape index: {}]   ;;  %s668_s3 = inlined_call_operand.hbm [shape: f32[16,128], index: 3, kind: output, shape index: {}]  }
   0x1   :  { %10 = vsyncpa [#allocation3 + $0x1], 0 }
   0x2   :  { %11 = vsyncpa [#allocation4], 0 }
   0x3   :  { %13 = vsyncpa [#allocation4 + $0x1], 0  ;;  %s494_s12 = smov 0   ;;  %s496_s13 = smov 0  }
   0x4   :  { %s498_s14 = smov 0   ;;  %s500_s15 = smov 0  }
   0x5 LB: > { %s515_s16 = sadd.s32 4294967295, %s470_s15   ;;  %s310_s17 = sadd.s32 4294967294, %s470_s15   ;;  %s470_s15 = sphi %s500_s15, %s683_s15   ;;  %s466_s14 = sphi %s498_s14, %s682_s14   ;;  %s462_s13 = sphi %s496_s13, %s681_s13   ;;  %s458_s12 = sphi %s494_s12, %s680_s12  }
   0x6   : > { %s519_s18 = sadd.s32 1, %s470_s15   ;;  %s26_s19 = sadd.s32 1, %s466_s14 }
   0x7   : > { %s23_s20 = ssub.s32 %s470_s15, %s519_s18  ;;  %p33_p0 = scmp.ne.s32.totalorder %s466_s14, %s462_s13 }
   0x8   : > { %p24_p1 = scmp.eq.s32.totalorder %s23_s20, 0  ;;  %p34_p2 = scmp.eq.s32.totalorder %s470_s15, 0 }
   0x9   : > { %p39_p3 = scmp.ne.s32.totalorder %s462_s13, %s458_s12  ;;  %p40_p4 = scmp.eq.s32.totalorder %s515_s16, 0 }
   0xa   : > { %s531_s21 = scalar_select %p24_p1, %s466_s14, %s26_s19  }
   0xb   : > { %p533_p5 = por %p34_p2, %p33_p0  ;;  %p537_p6 = por %p40_p4, %p39_p3 }
   0xc   : > { %p105_p7 = scmp.eq.s32.totalorder %s515_s16, 1  ;;  %p111_p8 = scmp.eq.s32.totalorder %s310_s17, 1 }
   0xd   : > { %p336_p10 = scmp.lt.s32.totalorder %s470_s15, 2  ;;  %s137_s26 = sand.u32 1, %s466_s14  }
   0xe   : > { %p544_p11 = por %p105_p7, %p33_p0  ;;  %p548_p12 = por %p111_p8, %p39_p3 }
   0xf   : > { %s314_s27 = sshll.u32 %s470_s15, 7  ;;  %s313_s28 = sshll.u32 %s137_s26, 3 }
  0x10   : > { %s672_s24 = scalar_select %p544_p11, 1, 0 }
  0x11   : > { %s673_s25 = scalar_select %p548_p12, 1, 0 }
  0x12   : > { %s557_s4 = scalar_lea.hbm %s665_s0, %s314_s27  ;;  %s141_s5 = scalar_lea.vmem [#allocation2], %s313_s28 }
  0x13   : > { %s148_s6 = sshll.u32 %s141_s5, 4  ;;  %p561_p13 = pnand %p336_p10, %p533_p5  ;;  %s565_s6 = int_to_ptr.vmem [resolvable:$true] %s148_s6 }
  0x14   : > { %s138_s8 = scalar_lea.sflag [#allocation3], %s137_s26  ;;  %s374_s9 = scalar_lea.hbm %s557_s4, 128 }
  0x15   : > { %p375_p2 = scmp.ne.s32.totalorder %s557_s4, %s374_s9  ;;  %p376_p3 = pneg %p561_p13 }
  0x16   : > { %s379_s17 = scalar_lea.hbm %s665_s0, 256  ;;  %p380_p5 = scmp.lt.u32.totalorder %s557_s4, %s665_s0 }
  0x17   : > { %p377_p4 = pnand %p376_p3, %p375_p2  ;;  %p381_p8 = scmp.lt.u32.totalorder %s379_s17, %s374_s9 }
  0x18   : > { %p383_p9 = scmp.lt.u32.totalorder %s374_s9, %s557_s4 }
  0x19   : > { %p378_p7 = pneg %p377_p4  ;;  %p382_p10 = por %p381_p8, %p380_p5 }
  0x1b   : > { %p384_p0 = por %p383_p9, %p382_p10 }
  0x1d   : > { %p385_p1 = pnand %p384_p0, %p378_p7 }
  0x1f   : > { %388 = shalt.err (!%p385_p1)
}
  0x20   : > { %s389_s22 = scalar_lea.vmem %s565_s6, 128  ;;  %s472_s26 = smov [#allocation2]  }
  0x21   : > { %p390_p2 = scmp.ne.s32.totalorder %s565_s6, %s389_s22  ;;  %s394_s27 = sshll.u32 %s472_s26, 4  ;;  %s395_s27 = int_to_ptr.vmem [resolvable:$false] %s394_s27 }
  0x22   : > { %s396_s28 = scalar_lea.vmem %s395_s27, 256  ;;  %p397_p11 = scmp.lt.s32.totalorder %s565_s6, %s395_s27 }
  0x23   : > { %p392_p4 = pnand %p390_p2, %p376_p3  ;;  %p398_p5 = scmp.lt.s32.totalorder %s396_s28, %s389_s22 }
  0x25   : > { %p393_p12 = pneg %p392_p4  ;;  %p399_p8 = por %p398_p5, %p397_p11 }
  0x27   : > { %p400_p9 = pnand %p399_p8, %p393_p12 }
  0x29   : > { %403 = shalt.err (!%p400_p9)
}
  0x2a   : > { %331 = dma.hbm_to_vmem [thread:$0]  (!%p561_p13), %s557_s4, 128, %s565_s6, %s138_s8  }
  0x2b   : > { %p675_p0 = scmp.lt.s32.totalorder %s470_s15, 3  ;;  %p676_p1 = scmp.ge.s32.totalorder %s470_s15, 1 }
  0x2d   : > { %p154_p3 = pnand %p676_p1, %p675_p0 }
  0x2e   : > { %s599_s29 = sand.u32 (!%p154_p3), 1, %s462_s13  }
  0x2f   : > { %157 = sbr.rel (%p154_p3) target bundleno = 397 (0x18d), region = 32  ;;  %s316_s30 = sshll.u32 (!%p154_p3), %s599_s29, 3 }
  0x30   : > { %s160_s5 = scalar_lea.sflag (!%p154_p3), [#allocation3], %s599_s29  ;;  %s163_s7 = scalar_lea.vmem (!%p154_p3), [#allocation2], %s316_s30 }
  0x36   : > { %449 = dma.done.wait (%p537_p6), %s160_s5, 128  }
  0x37   : > { %451 = vsyncadd (%p537_p6), %s160_s5, 4294967168  ;;  %v186_v0 = vld [vmem:[%s163_s7] sm:$0xff]  ;;  %v190_v1 = vlaneseq  ;;  %s321_s9 = sshll.u32 %s515_s16, 7  ;;  %s185_s10 = scalar_lea.vmem [#allocation5], %s316_s30 }
  0x38   : > { %187 = vadd.xlane.f32.xlu0 %v186_v0  ;;  %v318_v17 = vld [vmem:[%s666_s1] ss:$0 sm:$0xff]  ;;  %s240_s11 = sshll.u32 %s185_s10, 4  ;;  %s621_s20 = scalar_lea.hbm %s668_s3, %s321_s9  ;;  %s623_s11 = int_to_ptr.vmem [resolvable:$true] %s240_s11 }
  0x39   : > { %v191_v3 = vand.u32 127, %v190_v1  ;;  %v319_v19 = vld [vmem:[%s667_s2] ss:$0 sm:$0xff]  ;;  %s227_s22 = scalar_lea.sflag [#allocation4], %s599_s29  ;;  %s404_s26 = scalar_lea.vmem %s623_s11, 128 }
  0x3a   : > { %p405_p6 = scmp.ne.s32.totalorder %s623_s11, %s404_s26  ;;  %p677_p11 = scmp.ne.s32.totalorder %s672_s24, 0 }
  0x3b   : > { %vm193_vm0 = vcmp.lt.s32.totalorder %v191_v3, 32  ;;  %s473_s16 = smov [#allocation5]  }
  0x3c   : > { %p406_p12 = pnand %p405_p6, %p677_p11  ;;  %s408_s27 = sshll.u32 %s473_s16, 4  ;;  %s409_s27 = int_to_ptr.vmem [resolvable:$false] %s408_s27 }
  0x3d   : > { %s410_s28 = scalar_lea.vmem %s409_s27, 256  ;;  %p411_p7 = scmp.lt.s32.totalorder %s623_s11, %s409_s27 }
  0x3e   : > { %p407_p13 = pneg %p406_p12  ;;  %p412_p10 = scmp.lt.s32.totalorder %s410_s28, %s404_s26 }
  0x40   : > { %p413_p2 = por %p412_p10, %p411_p7 }
  0x42   : > { %p414_p4 = pnand %p413_p2, %p407_p13 }
  0xc5   : > { %v188_v2 = vpop.xlane.xlu0 %187 }
  0xc6   : > { %v189_v4 = vmul.f32 0.03125, %v188_v2 }
  0xc8   : > { %v192_v5 = vsub.f32 %v186_v0, %v189_v4 }
  0xca   : > { %v194_v6 = vmul.f32 %v192_v5, %v192_v5 }
  0xcc   : > { %v195_v7 = vsel %vm193_vm0, %v194_v6, 0.0 }
  0xcd   : > { %196 = vadd.xlane.f32.xlu0 %v195_v7 }
 0x15a   : > { %v197_v8 = vpop.xlane.xlu0 %196 }
 0x15b   : > { %v198_v9 = vmul.f32 0.032258064, %v197_v8 }
 0x15d   : > { %370 = vrsqrt.f32 %v198_v9  ;;  %vm201_vm1 = vcmp.eq.f32.partialorder %v198_v9, inf  ;;  %v204_v12 = vand.u32 2147483648, %v198_v9  ;;  %vm203_vm2 = vcmp.eq.f32.partialorder %v198_v9, 0.0 }
 0x167   : > { %v371_v10 = vpop.eup %370 }
 0x168   : > { %v200_v11 = vmul.f32 %v371_v10, %v198_v9 }
 0x16a   : > { %v202_v13 = vsel %vm201_vm1, %v198_v9, %v200_v11 }
 0x16b   : > { %v205_v14 = vsel %vm203_vm2, %v204_v12, %v202_v13 }
 0x16c   : > { %v206_v15 = vadd.f32 1e-06, %v205_v14 }
 0x16e   : > { %372 = vrcp.f32 %v206_v15 }
 0x178   : > { %v373_v16 = vpop.eup %372 }
 0x179   : > { %v210_v18 = vmul.f32 %v373_v16, %v192_v5 }
 0x17b   : > { %v217_v20 = vmul.f32 %v318_v17, %v210_v18 }
 0x17d   : > { %v224_v21 = vadd.f32 %v319_v19, %v217_v20 }
 0x17f   : > { %225 = vst [vmem:[%s185_s10] sm:$0xff] %v224_v21 }
 0x180   : > { %417 = shalt.err (!%p414_p4)
}
 0x181   : > { %s418_s29 = scalar_lea.hbm %s621_s20, 128  ;;  %s422_s7 = scalar_lea.hbm %s668_s3, 256 }
 0x182   : > { %p419_p5 = scmp.ne.s32.totalorder %s621_s20, %s418_s29  ;;  %p423_p0 = scmp.lt.u32.totalorder %s621_s20, %s668_s3 }
 0x183   : > { %p424_p1 = scmp.lt.u32.totalorder %s422_s7, %s418_s29  ;;  %p426_p6 = scmp.lt.u32.totalorder %s418_s29, %s621_s20 }
 0x184   : > { %p420_p8 = pnand %p419_p5, %p677_p11 }
 0x185   : > { %p425_p3 = por %p424_p1, %p423_p0 }
 0x186   : > { %p421_p9 = pneg %p420_p8 }
 0x187   : > { %p427_p12 = por %p426_p6, %p425_p3 }
 0x189   : > { %p428_p13 = pnand %p427_p12, %p421_p9 }
 0x18b   : > { %431 = shalt.err (!%p428_p13)
}
 0x18c   : > { %326 = dma.vmem_to_hbm [thread:$0]  (%p677_p11), %s623_s11, 128, %s621_s20, %s227_s22  }
 0x18d PF: > { %s252_s6 = sand.u32 1, %s458_s12   ;;  %p678_p7 = scmp.ne.s32.totalorder %s673_s25, 0 }
 0x18e   : > { %p679_p10 = scmp.ge.s32.totalorder %s470_s15, 2  ;;  %s253_s8 = scalar_lea.sflag [#allocation4], %s252_s6 }
 0x190   : > { %p333_p2 = pnand %p679_p10, %p678_p7 }
 0x192   : > { %453 = dma.done.wait (!%p333_p2), %s253_s8, 128  }
 0x193   : > { %455 = vsyncadd (!%p333_p2), %s253_s8, 4294967168  ;;  %p16_p4 = scmp.ge.s32.totalorder %s519_s18, 4   ;;  %s680_s12 = smov %s462_s13 }
 0x194   : > { %s681_s13 = smov %s466_s14  ;;  %s682_s14 = smov %s531_s21 }
 0x195   : > { %s683_s15 = smov %s519_s18  ;;  %18 = sbr.rel (!%p16_p4) target bundleno = 5 (0x5), region = 77 }
 0x19c   :  { %258 = vsyncpa [#allocation3], 1 }
 0x19d   :  { %260 = vsyncpa [#allocation3 + $0x1], 1 }
 0x19e   :  { %261 = vsyncpa [#allocation4], 1 }
 0x19f   :  { %263 = vsyncpa [#allocation4 + $0x1], 1 }

</bundles_post_ra>
